<compile_context>
chip_gen: v6e
topology: v6e:2x2x1
jax: 0.10.0
libtpu: 0.0.40
codegen_flags: <defaults>
</compile_context>

<pallas_src>
import jax
import jax.numpy as jnp
from jax import lax
from jax.experimental import pallas as pl
from jax.experimental.pallas import tpu as pltpu

LANES = 128
SUB_ROWS = 256                          # inner streaming chunk (256x128 f32 = 128 KiB)
TARGET_BLOCK_BYTES = 4 * 1024 * 1024    # ~4 MiB per input per grid step (native dtype)


def _round_up(x: int, m: int) -> int:
    return (x + m - 1) // m * m


def _cdiv(a: int, b: int) -> int:
    return (a + b - 1) // b


def _row_align(itemsize: int) -> int:
    # Sublane packing: f32 -> 8, bf16/f16 -> 16, int8/fp8 -> 32.
    return max(8, 32 // max(1, itemsize))


def _num_core_splits() -> int:
    """2 partial sums only on multi-TensorCore chips (v7x); 1 on v5e/v6e."""
    try:
        dev = jax.devices()[0]
        cores = getattr(dev, "num_cores", None)
        if cores is not None and int(cores) > 1:
            return 2
        kind = str(getattr(dev, "device_kind", "")).lower()
        if "v7" in kind or "7x" in kind:
            return 2
    except Exception:
        pass
    return 1


def _make_mse_kernel(rows: int, tile_rows: int, sub_rows: int,
                     steps_per_core: int, num_splits: int):
    """Build the kernel with all (static) shape parameters baked in."""
    total_steps = _cdiv(rows, tile_rows)
    any_partial = (rows % tile_rows != 0) or (num_splits * steps_per_core != total_steps)
    n_sub = tile_rows // sub_rows
    assert tile_rows % sub_rows == 0 and sub_rows % 8 == 0

    def _fold(sq):
        # (sub_rows, 128) -> (8, 128): reduce only over the leading vreg-group
        # axis -> plain VPU adds, no cross-lane (XLU) work.
        return sq.reshape(sub_rows // 8, 8, LANES).sum(axis=0)

    def kernel(x_ref, y_ref, o_ref, acc_ref):
        c = pl.program_id(0)           # partial-sum / core index
        j = pl.program_id(1)           # step within this core's row range

        @pl.when(j == 0)
        def _():
            acc_ref[...] = jnp.zeros_like(acc_ref)

        start = (c * steps_per_core + j) * tile_rows   # logical first row of this block

        def _run(body):
            if n_sub == 1:
                acc_ref[...] = body(0, acc_ref[...])
            else:
                acc_ref[...] = lax.fori_loop(0, n_sub, body, acc_ref[...],
                                             unroll=n_sub <= 8)

        def unmasked_body(i, acc):
            off = pl.multiple_of(i * sub_rows, sub_rows)
            xs = x_ref[pl.ds(off, sub_rows), :].astype(jnp.float32)
            ys = y_ref[pl.ds(off, sub_rows), :].astype(jnp.float32)
            d = xs - ys
            return acc + _fold(d * d)

        if any_partial:
            needs_mask = start + tile_rows > rows

            @pl.when(needs_mask)
            def _():
                # Cheap mask: (sub_rows, 1) row iota, lane-broadcast compare.
                row = lax.broadcasted_iota(jnp.int32, (sub_rows, 1), 0)

                def masked_body(i, acc):
                    off = pl.multiple_of(i * sub_rows, sub_rows)
                    xs = x_ref[pl.ds(off, sub_rows), :].astype(jnp.float32)
                    ys = y_ref[pl.ds(off, sub_rows), :].astype(jnp.float32)
                    d = xs - ys
                    valid = (start + off + row) < rows
                    return acc + _fold(jnp.where(valid, d * d, 0.0))

                _run(masked_body)

            @pl.when(jnp.logical_not(needs_mask))
            def _():
                _run(unmasked_body)
        else:
            _run(unmasked_body)

        @pl.when(j == steps_per_core - 1)
        def _():
            # Single cross-lane reduce + scalar SMEM store per partial sum.
            o_ref[0, 0] = jnp.sum(acc_ref[...])

    return kernel


def content_loss_mse(input_images: jax.Array, target_images: jax.Array,
                     *, min_pallas_elements: int = 1 << 18) -> jax.Array:
    """Equivalent of nn.MSELoss()(input_images, target_images) -> scalar f32."""
    if input_images.shape != target_images.shape:
        raise ValueError("MSELoss requires matching shapes")
    n = int(input_images.size)
    if n == 0:
        return jnp.float32(0.0)

    # Tiny-input bypass: for sub-block tensors a plain XLA fusion beats the
    # pallas_call launch + pipeline prologue on every generation.
    if n < min_pallas_elements:
        diff = input_images.astype(jnp.float32) - target_images.astype(jnp.float32)
        return jnp.mean(diff * diff)

    # Flatten (free for contiguous arrays) -- NO dtype cast here so sub-32-bit
    # inputs (bf16/fp8/int8) stream at native width.
    x = input_images.reshape(-1)
    y = target_images.reshape(-1)

    rem = n % LANES
    if rem:
        # Rare path: n not a multiple of 128 lanes -> pad to the next lane row.
        # Padded elements are equal (0 vs 0) so they contribute 0.
        pad = LANES - rem
        x = jnp.pad(x, (0, pad))
        y = jnp.pad(y, (0, pad))

    rows = x.shape[0] // LANES
    x2 = x.reshape(rows, LANES)
    y2 = y.reshape(rows, LANES)

    itemsize = max(1, x2.dtype.itemsize)
    align = _row_align(itemsize)
    # Dtype-scaled max tile: keep ~4 MiB of native-width data per DMA block.
    max_tile_rows = max(SUB_ROWS,
                        (TARGET_BLOCK_BYTES // (LANES * itemsize)) // SUB_ROWS * SUB_ROWS)

    if _round_up(rows, align) <= SUB_ROWS:
        tile_rows = _round_up(rows, align)
        sub_rows = tile_rows
    else:
        tile_rows = min(max_tile_rows, _round_up(rows, SUB_ROWS))
        sub_rows = SUB_ROWS

    total_steps = _cdiv(rows, tile_rows)
    num_splits = _num_core_splits() if total_steps > 1 else 1
    steps_per_core = _cdiv(total_steps, num_splits)
    needs_clamp = num_splits * steps_per_core > total_steps

    kernel = _make_mse_kernel(rows, tile_rows, sub_rows, steps_per_core, num_splits)

    def idx_map(c, j):
        blk = c * steps_per_core + j
        if needs_clamp:
            # Keep overflow steps of the second split in-bounds; they are fully
            # zero-masked inside the kernel (via the unclamped `start`).
            blk = jnp.minimum(blk, total_steps - 1)
        return (blk, 0)

    if num_splits > 1:
        # Only CORE_PARALLEL actually shards a grid axis across TensorCores.
        split_sem = getattr(pltpu, "CORE_PARALLEL", "parallel")
    else:
        split_sem = "arbitrary"

    cost = pl.CostEstimate(
        flops=3 * n,
        transcendentals=0,
        bytes_accessed=x2.size * itemsize + y2.size * itemsize + num_splits * 4,
    )

    partials = pl.pallas_call(
        kernel,
        out_shape=jax.ShapeDtypeStruct((1, num_splits), jnp.float32),
        grid_spec=pltpu.PrefetchScalarGridSpec(
            num_scalar_prefetch=0,
            grid=(num_splits, steps_per_core),
            in_specs=[
                pl.BlockSpec((tile_rows, LANES), idx_map),
                pl.BlockSpec((tile_rows, LANES), idx_map),
            ],
            out_specs=pl.BlockSpec((1, 1), lambda c, j: (0, c),
                                   memory_space=pltpu.MemorySpace.SMEM),
            scratch_shapes=[pltpu.VMEM((8, LANES), jnp.float32)],
        ),
        compiler_params=pltpu.CompilerParams(
            dimension_semantics=(split_sem, "arbitrary"),
            vmem_limit_bytes=32 * 1024 * 1024,
        ),
        cost_estimate=cost,
    )(x2, y2)

    # mean = sum of the per-core partial sums / number of (unpadded) elements.
    return (jnp.sum(partials) / jnp.float32(n)).astype(jnp.float32)


if __name__ == "__main__":
    key = jax.random.PRNGKey(0)
    k1, k2, k3, k4 = jax.random.split(key, 4)

    # Small NCHW images consistent with the module: batch=2, channels=4, 16x16.
    x = jax.random.normal(k1, (2, 4, 16, 16), dtype=jnp.float32)
    y = jax.random.normal(k2, (2, 4, 16, 16), dtype=jnp.float32)
    loss = content_loss_mse(x, y, min_pallas_elements=0)   # force the Pallas path
    jax.block_until_ready(loss)
    ref = jnp.mean((x - y) ** 2)
    assert jnp.allclose(loss, ref, rtol=1e-5, atol=1e-6), (loss, ref)

    # Larger case: multiple grid steps + masked partial final block.
    a = jax.random.normal(k3, (2, 3, 512, 512), dtype=jnp.float32)
    b = jax.random.normal(k4, (2, 3, 512, 512), dtype=jnp.float32)
    loss2 = content_loss_mse(a, b, min_pallas_elements=0)
    jax.block_until_ready(loss2)
    ref2 = jnp.mean((a - b) ** 2)
    assert jnp.allclose(loss2, ref2, rtol=1e-5, atol=1e-6), (loss2, ref2)

    # Native-width (bf16) streaming path.
    xb = jax.random.normal(k1, (2, 4, 64, 64), dtype=jnp.bfloat16)
    yb = jax.random.normal(k2, (2, 4, 64, 64), dtype=jnp.bfloat16)
    loss3 = content_loss_mse(xb, yb, min_pallas_elements=0)
    jax.block_until_ready(loss3)
    ref3 = jnp.mean((xb.astype(jnp.float32) - yb.astype(jnp.float32)) ** 2)
    assert jnp.allclose(loss3, ref3, rtol=1e-4, atol=1e-5), (loss3, ref3)

    print("KERNEL_OK")
</pallas_src>

<mosaic_0001>
module attributes {stable_mosaic.version = 11 : i64} {
  func.func @kernel(%arg0: i32, %arg1: i32, %arg2: memref<16x128xf32, #tpu.memory_space<vmem>>, %arg3: memref<16x128xf32, #tpu.memory_space<vmem>>, %arg4: memref<1x1xf32, #tpu.memory_space<smem>>, %arg5: memref<8x128xf32, #tpu.memory_space<vmem>>) attributes {dimension_semantics = [#tpu.dimension_semantics<arbitrary>, #tpu.dimension_semantics<arbitrary>], iteration_bounds = array<i64: 1, 1>, scalar_prefetch = 0 : i64, scratch_operands = 1 : i64, tpu.core_type = #tpu.core_type<tc>, window_params = [{transform_indices = @transform_0, window_bounds = array<i64: 16, 128>}, {transform_indices = @transform_1, window_bounds = array<i64: 16, 128>}, {transform_indices = @transform_2, window_bounds = array<i64: 1, 1>}]} {
    %c0_i32 = arith.constant 0 : i32
    %0 = arith.cmpi eq, %arg1, %c0_i32 : i32
    %1 = arith.extui %0 : i1 to i32
    %c0_i32_0 = arith.constant 0 : i32
    %2 = arith.cmpi ne, %1, %c0_i32_0 : i32
    scf.if %2 {
      %cst_9 = arith.constant 0.000000e+00 : f32
      %18 = vector.broadcast %cst_9 : f32 to vector<8x128xf32>
      %c0_10 = arith.constant 0 : index
      %c0_11 = arith.constant 0 : index
      %19 = vector.load %arg5[%c0_10, %c0_11] : memref<8x128xf32, #tpu.memory_space<vmem>>, vector<8x128xf32>
      tpu.vector_store %arg5[%c0_10, %c0_11], %18 {strides = array<i32>} : memref<8x128xf32, #tpu.memory_space<vmem>>, vector<8x128xf32>,
    } else {
    }
    %c0 = arith.constant 0 : index
    %c0_1 = arith.constant 0 : index
    %3 = vector.load %arg5[%c0, %c0_1] : memref<8x128xf32, #tpu.memory_space<vmem>>, vector<8x128xf32>
    %c0_i32_2 = arith.constant 0 : i32
    %4 = tpu.assume_multiple %c0_i32_2, 16 : i32
    %5 = arith.index_cast %4 : i32 to index
    %c0_3 = arith.constant 0 : index
    %6 = vector.load %arg2[%5, %c0_3] : memref<16x128xf32, #tpu.memory_space<vmem>>, vector<16x128xf32>
    %7 = arith.index_cast %4 : i32 to index
    %c0_4 = arith.constant 0 : index
    %8 = vector.load %arg3[%7, %c0_4] : memref<16x128xf32, #tpu.memory_space<vmem>>, vector<16x128xf32>
    %9 = arith.subf %6, %8 : vector<16x128xf32>
    %10 = arith.mulf %9, %9 : vector<16x128xf32>
    %11 = vector.shape_cast %10 : vector<16x128xf32> to vector<2x8x128xf32>
    %cst = arith.constant dense<0.000000e+00> : vector<8x128xf32>
    %12 = vector.multi_reduction <add>, %11, %cst [0] : vector<2x8x128xf32> to vector<8x128xf32>
    %13 = arith.addf %3, %12 : vector<8x128xf32>
    %c0_5 = arith.constant 0 : index
    %c0_6 = arith.constant 0 : index
    %14 = vector.load %arg5[%c0_5, %c0_6] : memref<8x128xf32, #tpu.memory_space<vmem>>, vector<8x128xf32>
    tpu.vector_store %arg5[%c0_5, %c0_6], %13 {strides = array<i32>} : memref<8x128xf32, #tpu.memory_space<vmem>>, vector<8x128xf32>,
    %c0_i32_7 = arith.constant 0 : i32
    %15 = arith.cmpi eq, %arg1, %c0_i32_7 : i32
    %16 = arith.extui %15 : i1 to i32
    %c0_i32_8 = arith.constant 0 : i32
    %17 = arith.cmpi ne, %16, %c0_i32_8 : i32
    scf.if %17 {
      %c0_9 = arith.constant 0 : index
      %c0_10 = arith.constant 0 : index
      %18 = vector.load %arg5[%c0_9, %c0_10] : memref<8x128xf32, #tpu.memory_space<vmem>>, vector<8x128xf32>
      %19 = vector.shape_cast %18 : vector<8x128xf32> to vector<1x8x128xf32>
      %cst_11 = arith.constant dense<0.000000e+00> : vector<1xf32>
      %20 = vector.multi_reduction <add>, %19, %cst_11 [1, 2] : vector<1x8x128xf32> to vector<1xf32>
      %21 = vector.shape_cast %20 : vector<1xf32> to vector<1x1x1xf32>
      %22 = vector.extract %21[0, 0, 0] : f32 from vector<1x1x1xf32>
      %c0_12 = arith.constant 0 : index
      %c0_13 = arith.constant 0 : index
      %23 = memref.load %arg4[%c0_12, %c0_13] : memref<1x1xf32, #tpu.memory_space<smem>>
      memref.store %22, %arg4[%c0_12, %c0_13] : memref<1x1xf32, #tpu.memory_space<smem>>
    } else {
    }
    return
  }
  func.func @transform_0(%arg0: i32, %arg1: i32) -> (i32, i32) {
    %c1_i32 = arith.constant 1 : i32
    %0 = arith.muli %arg0, %c1_i32 : i32
    %1 = arith.addi %0, %arg1 : i32
    %c0_i32 = arith.constant 0 : i32
    %c0_i32_0 = arith.constant 0 : i32
    return %1, %c0_i32 : i32, i32
  }
  func.func @transform_1(%arg0: i32, %arg1: i32) -> (i32, i32) {
    %c1_i32 = arith.constant 1 : i32
    %0 = arith.muli %arg0, %c1_i32 : i32
    %1 = arith.addi %0, %arg1 : i32
    %c0_i32 = arith.constant 0 : i32
    %c0_i32_0 = arith.constant 0 : i32
    return %1, %c0_i32 : i32, i32
  }
  func.func @transform_2(%arg0: i32, %arg1: i32) -> (i32, i32) {
    %c0_i32 = arith.constant 0 : i32
    %c0_i32_0 = arith.constant 0 : i32
    return %c0_i32, %arg0 : i32, i32
  }
}

</mosaic_0001>

<bundles_post_ra>
// kernel: tpu_custom_call.1
= control target key start
LH: loop header
LB: loop body
LE: loop exit
PB: predicated region body
PF: predicated region fallthrough
CT: control target
= control target key end

     0   :  { %7 = vsyncpa [#allocation4], 0  ;;  %s189_s0 = inlined_call_operand.hbm [shape: f32[16,128], index: 0, kind: input, shape index: {}]   ;;  %s190_s1 = inlined_call_operand.hbm [shape: f32[16,128], index: 1, kind: input, shape index: {}]   ;;  %s191_s2 = inlined_call_operand.hbm [shape: f32[1,1], index: 2, kind: output, shape index: {}]  }
   0x1   :  { %8 = vsyncpa [#allocation7], 0 }
   0x2   :  { %9 = vsyncpa [#allocation5], 0  ;;  %s160_s9 = smov [#allocation3]  }
   0x3   :  { %s19_s10 = sshll.u32 %s160_s9, 4  ;;  %s20_s10 = int_to_ptr.vmem [resolvable:$true] %s19_s10 }
   0x4   :  { %s114_s11 = scalar_lea.vmem %s20_s10, 256  ;;  %p119_p1 = scmp.lt.s32.totalorder %s20_s10, %s20_s10 }
   0x5   :  { %p115_p0 = scmp.ne.s32.totalorder %s20_s10, %s114_s11  ;;  %p120_p2 = scmp.lt.s32.totalorder %s114_s11, %s114_s11 }
   0x7   :  { %p121_p3 = por %p120_p2, %p119_p1 }
   0x9   :  { %p122_p4 = pnand %p121_p3, %p115_p0 }
   0xb   :  { %125 = shalt.err (!%p122_p4)
}
   0xc   :  { %s161_s12 = smov 128   ;;  %s162_s13 = smov 8  }
   0xd   :  { %25 = dma.hbm_to_vmem [thread:$0]  %s189_s0, 256, %s20_s10, [#allocation4], %s161_s12, %s161_s12, %s162_s13  }
   0xe   :  { %s163_s16 = smov [#allocation6]  }
   0xf   :  { %s35_s17 = sshll.u32 %s163_s16, 4  ;;  %s36_s17 = int_to_ptr.vmem [resolvable:$true] %s35_s17 }
  0x10   :  { %s134_s18 = scalar_lea.vmem %s36_s17, 256  ;;  %p139_p6 = scmp.lt.s32.totalorder %s36_s17, %s36_s17 }
  0x11   :  { %p135_p5 = scmp.ne.s32.totalorder %s36_s17, %s134_s18  ;;  %p140_p7 = scmp.lt.s32.totalorder %s134_s18, %s134_s18 }
  0x13   :  { %p141_p8 = por %p140_p7, %p139_p6 }
  0x15   :  { %p142_p9 = pnand %p141_p8, %p135_p5 }
  0x17   :  { %145 = shalt.err (!%p142_p9)
}
  0x18   :  { %41 = dma.hbm_to_vmem [thread:$0]  %s190_s1, 256, %s36_s17, [#allocation7], %s161_s12, %s161_s12, %s162_s13  }
  0x19   :  { %154 = dma.done.wait [#allocation4], 256  }
  0x1a   :  { %155 = vsyncadd [#allocation4], 4294967040 }
  0x1b   :  { %156 = dma.done.wait [#allocation7], 256  }
  0x1c   :  { %157 = vsyncadd [#allocation7], 4294967040  ;;  %v58_v0 = vld [vmem:[#allocation3] sm:$0xff]  ;;  %v59_v1 = vld [vmem:[#allocation3 + $0x8] sm:$0xff]  ;;  %s164_s1 = smov [#allocation8]  }
  0x1d   :  { %v60_v2 = vld [vmem:[#allocation6] sm:$0xff]  ;;  %v61_v3 = vld [vmem:[#allocation6 + $0x8] sm:$0xff] }
  0x1e   :  { %v62_v4 = vsub.f32 %v58_v0, %v60_v2  ;;  %v63_v5 = vsub.f32 %v59_v1, %v61_v3 }
  0x20   :  { %v64_v6 = vmul.f32 %v62_v4, %v62_v4  ;;  %v65_v7 = vmul.f32 %v63_v5, %v63_v5 }
  0x22   :  { %v66_v8 = vadd.f32 %v65_v7, %v64_v6 }
  0x24   :  { %73 = vadd.xlane.f32.xlu0 %v66_v8 }
  0xad   :  { %v74_v9 = vpop.xlane.xlu0 %73 }
  0xae   :  { %v75_v10 = vrot.slane %v74_v9, 4 }
  0xb0   :  { %v76_v11 = vadd.f32 %v75_v10, %v74_v9 }
  0xb2   :  { %v77_v12 = vrot.slane %v76_v11, 2 }
  0xb4   :  { %v78_v13 = vadd.f32 %v77_v12, %v76_v11 }
  0xb6   :  { %v79_v14 = vrot.slane %v78_v13, 1 }
  0xb8   :  { %v80_v15 = vadd.f32 %v79_v14, %v78_v13 }
  0xba   :  { %99 = vpush %v80_v15 }
  0xeb   :  { %s100_s0 = spop %99 }
  0xec   :  { %83 = sst [smem:[#allocation8]] %s100_s0 }
  0xed   :  { %91 = dma.smem_to_hbm %s164_s1, 16, %s191_s2, [#allocation5]  }
  0xee   :  { %158 = dma.done.wait [#allocation5], 16  }
  0xef   :  { %159 = vsyncadd [#allocation5], 4294967280 }
  0xf0   :  { %95 = sfence }
  0xf1   :  { %96 = vsyncpa [#allocation4], 1 }
  0xf2   :  { %97 = vsyncpa [#allocation7], 1 }
  0xf3   :  { %98 = vsyncpa [#allocation5], 1 }

</bundles_post_ra>
